<compile_context>
chip_gen: v6e
topology: v6e:2x2x1
jax: 0.10.0
libtpu: 0.0.40
codegen_flags: <defaults>
</compile_context>

<pallas_src>
import jax
import jax.numpy as jnp
from jax.experimental import pallas as pl
from jax.experimental.pallas import tpu as pltpu


def _round_up(x, m):
    return ((x + m - 1) // m) * m


def _critic_kernel(xt_ref, w1_ref, w2_ref, b2_ref, w3_ref, b3_ref, o_ref):
    """One batch tile, feature-major / batch-on-lanes dataflow.

    xt_ref : (n_states+1, TILE_B)  matmul_dtype  -- last row is ones (b1 fold)
    w1_ref : (H, n_states+1)       matmul_dtype  -- [W1^T | b1]
    w2_ref : (H, H)                matmul_dtype  -- W2^T
    b2_ref : (H, 1)                f32
    w3_ref : (1, H)                matmul_dtype  -- W3^T
    b3_ref : (1,)                  f32 (SMEM scalar)
    o_ref  : (1, TILE_B)           f32           -- lane-dense value row
    """
    # fc1 (+ folded bias) on the MXU; ReLU in f32 on the VPU.
    h1 = jnp.dot(w1_ref[...], xt_ref[...], preferred_element_type=jnp.float32)
    h1 = jnp.maximum(h1, 0.0)                                    # (H, TILE_B)

    # fc2 on the MXU (f32 accumulate); bias + ReLU in f32 on the VPU.
    h2 = jnp.dot(w2_ref[...], h1.astype(w2_ref.dtype),
                 preferred_element_type=jnp.float32)
    h2 = jnp.maximum(h2 + b2_ref[...], 0.0)                      # (H, TILE_B)

    # fc3 value head: (1,H) @ (H,TILE_B) -> already lane-dense (1, TILE_B).
    v = jnp.dot(w3_ref[...], h2.astype(w3_ref.dtype),
                preferred_element_type=jnp.float32) + b3_ref[0]
    o_ref[...] = v.astype(o_ref.dtype)


def prepare_critic_params(params, matmul_dtype=jnp.bfloat16):
    """Pre-transpose / pre-cast params once (hoisted out of the hot path)."""
    H = params["w1"].shape[1]
    w1_aug = jnp.concatenate(
        [params["w1"].T, params["b1"].reshape(H, 1)], axis=1)    # (H, n_states+1)
    return {
        "w1a": w1_aug.astype(matmul_dtype),
        "w2t": params["w2"].T.astype(matmul_dtype),              # (H, H)
        "b2t": params["b2"].reshape(H, 1).astype(jnp.float32),   # (H, 1)
        "w3t": params["w3"].T.astype(matmul_dtype),              # (1, H)
        "b3": params["b3"].reshape(1).astype(jnp.float32),       # (1,)
    }


def critic_forward(x, prepared, *, tile_b=2048):
    """x: (B, n_states) float32 -> (B, 1) float32 state values."""
    B, n_states = x.shape
    w1a = prepared["w1a"]
    H, k_aug = w1a.shape
    assert k_aug == n_states + 1
    matmul_dtype = w1a.dtype
    itm = jnp.dtype(matmul_dtype).itemsize

    # Batch tile on the lane axis: multiple of 128, as fat as tile_b allows.
    tile = _round_up(min(tile_b, _round_up(B, 128)), 128)
    # Keep >= 2 grid steps when the batch allows it (v7x has 2 TensorCores).
    if B > 128 and _round_up(B, tile) // tile < 2:
        tile = max(128, _round_up(pl.cdiv(B, 2), 128))
    Bp = _round_up(B, tile)
    G = Bp // tile

    # x^T with a ones row appended (folds b1 into fc1's MXU weights);
    # lane-dense over the batch.  Pad columns are sliced off at the end.
    xt = jnp.concatenate(
        [x, jnp.ones((B, 1), x.dtype)], axis=1).T.astype(matmul_dtype)
    if Bp != B:
        xt = jnp.pad(xt, ((0, 0), (0, Bp - B)))

    w_bytes = (w1a.size + prepared["w2t"].size + prepared["w3t"].size) * itm
    flops = 2 * Bp * (k_aug * H + H * H + H)
    bytes_accessed = (Bp * k_aug * itm + Bp * 4 + w_bytes
                      + prepared["b2t"].size * 4 + 4)

    # VMEM sized from the actual per-tile footprint (+ headroom).
    vmem_bytes = (2 * k_aug * tile * itm          # x^T tile, double-buffered
                  + 2 * tile * 4                  # output tile, double-buffered
                  + 4 * H * tile * 4              # h1/h2 f32 intermediates
                  + 2 * H * tile * itm            # narrow copies fed to the MXU
                  + 4 * w_bytes + 4 * H * 4
                  + (2 << 20))                    # fixed headroom
    vmem_limit = int(min(max(vmem_bytes, 4 << 20), 100 << 20))

    out = pl.pallas_call(
        _critic_kernel,
        out_shape=jax.ShapeDtypeStruct((1, Bp), jnp.float32),
        grid=(G,),
        in_specs=[
            pl.BlockSpec((k_aug, tile), lambda i: (0, i)),       # streamed x^T
            pl.BlockSpec(w1a.shape, lambda i: (0, 0)),           # VMEM-resident
            pl.BlockSpec(prepared["w2t"].shape, lambda i: (0, 0)),
            pl.BlockSpec(prepared["b2t"].shape, lambda i: (0, 0)),
            pl.BlockSpec(prepared["w3t"].shape, lambda i: (0, 0)),
            pl.BlockSpec(memory_space=pltpu.MemorySpace.SMEM),   # b3 scalar
        ],
        out_specs=pl.BlockSpec((1, tile), lambda i: (0, i)),     # lane-dense out
        compiler_params=pltpu.CompilerParams(
            dimension_semantics=("parallel",),   # megacore / v7x 2-TC split
            vmem_limit_bytes=vmem_limit,
        ),
        cost_estimate=pl.CostEstimate(
            flops=int(flops), transcendentals=0,
            bytes_accessed=int(bytes_accessed)),
    )(xt, w1a, prepared["w2t"], prepared["b2t"], prepared["w3t"], prepared["b3"])

    return out[0, :B].reshape(B, 1)


def init_params(key, n_states, hidden_dim):
    """Deterministic PyTorch-Linear-style init (uniform +/- 1/sqrt(fan_in))."""
    ks = jax.random.split(key, 6)

    def lin(kw, kb, fan_in, fan_out):
        bound = 1.0 / jnp.sqrt(jnp.float32(fan_in))
        w = jax.random.uniform(kw, (fan_in, fan_out), jnp.float32, -bound, bound)
        b = jax.random.uniform(kb, (1, fan_out), jnp.float32, -bound, bound)
        return w, b

    w1, b1 = lin(ks[0], ks[1], n_states, hidden_dim)
    w2, b2 = lin(ks[2], ks[3], hidden_dim, hidden_dim)
    w3, b3 = lin(ks[4], ks[5], hidden_dim, 1)
    return {"w1": w1, "b1": b1, "w2": w2, "b2": b2, "w3": w3, "b3": b3}


def critic_forward_ref(x, p):
    h1 = jnp.maximum(x @ p["w1"] + p["b1"], 0.0)
    h2 = jnp.maximum(h1 @ p["w2"] + p["b2"], 0.0)
    return h2 @ p["w3"] + p["b3"]


# TODO(synk): optim.Adam training machinery from the PyTorch module is not a
# forward-pass op and is not implemented here.

if __name__ == "__main__":
    n_states = 4      # CartPole-v1 observation dim
    hidden_dim = 128  # module default
    batch = 8

    key = jax.random.PRNGKey(0)
    k_x, k_p = jax.random.split(key)
    x = jax.random.normal(k_x, (batch, n_states), jnp.float32)
    params = init_params(k_p, n_states, hidden_dim)

    ref = critic_forward_ref(x, params)

    # f32 MXU path: tight parity check vs the pure-JAX reference.
    prep_f32 = prepare_critic_params(params, matmul_dtype=jnp.float32)
    out_f32 = jax.block_until_ready(critic_forward(x, prep_f32))
    assert out_f32.shape == (batch, 1)
    assert jnp.allclose(out_f32, ref, atol=1e-3, rtol=1e-3)

    # Default bf16-MXU path: looser tolerance vs the f32 reference.
    prep_bf16 = prepare_critic_params(params)  # bf16 operands, f32 accumulate
    out_bf16 = jax.block_until_ready(critic_forward(x, prep_bf16))
    assert out_bf16.shape == (batch, 1)
    assert jnp.allclose(out_bf16, ref, atol=3e-2, rtol=3e-2)

    # Multi-tile grid + batch-padding path (B not a multiple of the tile);
    # also exercises the >=2-grid-step cap for v7x.
    x_big = jax.random.normal(jax.random.PRNGKey(1), (600, n_states), jnp.float32)
    out_big = jax.block_until_ready(critic_forward(x_big, prep_bf16))
    ref_big = critic_forward_ref(x_big, params)
    assert out_big.shape == (600, 1)
    assert jnp.allclose(out_big, ref_big, atol=3e-2, rtol=3e-2)

    print("KERNEL_OK")
</pallas_src>

<mosaic_0001>
module attributes {stable_mosaic.version = 11 : i64} {
  func.func @_critic_kernel(%arg0: i32, %arg1: memref<5x128xf32, #tpu.memory_space<vmem>>, %arg2: memref<128x5xf32, #tpu.memory_space<vmem>>, %arg3: memref<128x128xf32, #tpu.memory_space<vmem>>, %arg4: memref<128x1xf32, #tpu.memory_space<vmem>>, %arg5: memref<1x128xf32, #tpu.memory_space<vmem>>, %arg6: memref<1xf32, #tpu.memory_space<smem>>, %arg7: memref<1x128xf32, #tpu.memory_space<vmem>>) attributes {dimension_semantics = [#tpu.dimension_semantics<parallel>], iteration_bounds = array<i64: 1>, scalar_prefetch = 0 : i64, scratch_operands = 0 : i64, tpu.core_type = #tpu.core_type<tc>, window_params = [{transform_indices = @transform_0, window_bounds = array<i64: 5, 128>}, {pipeline_mode = #tpu.pipeline_mode<synchronous>, transform_indices = @transform_1, window_bounds = array<i64: 128, 5>}, {pipeline_mode = #tpu.pipeline_mode<synchronous>, transform_indices = @transform_2, window_bounds = array<i64: 128, 128>}, {pipeline_mode = #tpu.pipeline_mode<synchronous>, transform_indices = @transform_3, window_bounds = array<i64: 128, 1>}, {pipeline_mode = #tpu.pipeline_mode<synchronous>, transform_indices = @transform_4, window_bounds = array<i64: 1, 128>}, {transform_indices = @transform_5, window_bounds = array<i64: 1>}, {transform_indices = @transform_6, window_bounds = array<i64: 1, 128>}]} {
    %c0 = arith.constant 0 : index
    %c0_0 = arith.constant 0 : index
    %0 = vector.load %arg2[%c0, %c0_0] : memref<128x5xf32, #tpu.memory_space<vmem>>, vector<128x5xf32>
    %c0_1 = arith.constant 0 : index
    %c0_2 = arith.constant 0 : index
    %1 = vector.load %arg1[%c0_1, %c0_2] : memref<5x128xf32, #tpu.memory_space<vmem>>, vector<5x128xf32>
    %cst = arith.constant dense<0.000000e+00> : vector<128x128xf32>
    %2 = tpu.matmul %0, %1, %cst {dimension_numbers = #tpu.dot_dimension_numbers<[1], [0], [0], [1], [0, 0, 1, 1], [], []>} : vector<128x5xf32>, vector<5x128xf32>, vector<128x128xf32> -> vector<128x128xf32>
    %cst_3 = arith.constant 0.000000e+00 : f32
    %3 = vector.broadcast %cst_3 : f32 to vector<128x128xf32>
    %4 = arith.maximumf %2, %3 : vector<128x128xf32>
    %c0_4 = arith.constant 0 : index
    %c0_5 = arith.constant 0 : index
    %5 = vector.load %arg3[%c0_4, %c0_5] : memref<128x128xf32, #tpu.memory_space<vmem>>, vector<128x128xf32>
    %cst_6 = arith.constant dense<0.000000e+00> : vector<128x128xf32>
    %6 = tpu.matmul %5, %4, %cst_6 {dimension_numbers = #tpu.dot_dimension_numbers<[1], [0], [0], [1], [0, 0, 1, 1], [], []>} : vector<128x128xf32>, vector<128x128xf32>, vector<128x128xf32> -> vector<128x128xf32>
    %c0_7 = arith.constant 0 : index
    %c0_8 = arith.constant 0 : index
    %7 = vector.load %arg4[%c0_7, %c0_8] : memref<128x1xf32, #tpu.memory_space<vmem>>, vector<128x1xf32>
    %8 = vector.broadcast %7 : vector<128x1xf32> to vector<128x128xf32>
    %9 = arith.addf %6, %8 : vector<128x128xf32>
    %cst_9 = arith.constant 0.000000e+00 : f32
    %10 = vector.broadcast %cst_9 : f32 to vector<128x128xf32>
    %11 = arith.maximumf %9, %10 : vector<128x128xf32>
    %c0_10 = arith.constant 0 : index
    %c0_11 = arith.constant 0 : index
    %12 = vector.load %arg5[%c0_10, %c0_11] : memref<1x128xf32, #tpu.memory_space<vmem>>, vector<1x128xf32>
    %cst_12 = arith.constant dense<0.000000e+00> : vector<1x128xf32>
    %13 = tpu.matmul %12, %11, %cst_12 {dimension_numbers = #tpu.dot_dimension_numbers<[1], [0], [0], [1], [0, 0, 1, 1], [], []>} : vector<1x128xf32>, vector<128x128xf32>, vector<1x128xf32> -> vector<1x128xf32>
    %c0_13 = arith.constant 0 : index
    %14 = memref.load %arg6[%c0_13] : memref<1xf32, #tpu.memory_space<smem>>
    %15 = vector.broadcast %14 : f32 to vector<1x128xf32>
    %16 = arith.addf %13, %15 : vector<1x128xf32>
    %c0_14 = arith.constant 0 : index
    %c0_15 = arith.constant 0 : index
    %17 = vector.load %arg7[%c0_14, %c0_15] : memref<1x128xf32, #tpu.memory_space<vmem>>, vector<1x128xf32>
    tpu.vector_store %arg7[%c0_14, %c0_15], %16 {strides = array<i32>} : memref<1x128xf32, #tpu.memory_space<vmem>>, vector<1x128xf32>,
    return
  }
  func.func @transform_0(%arg0: i32) -> (i32, i32) {
    %c0_i32 = arith.constant 0 : i32
    %c0_i32_0 = arith.constant 0 : i32
    return %c0_i32, %arg0 : i32, i32
  }
  func.func @transform_1(%arg0: i32) -> (i32, i32) {
    %c0_i32 = arith.constant 0 : i32
    %c0_i32_0 = arith.constant 0 : i32
    %c0_i32_1 = arith.constant 0 : i32
    return %c0_i32, %c0_i32_0 : i32, i32
  }
  func.func @transform_2(%arg0: i32) -> (i32, i32) {
    %c0_i32 = arith.constant 0 : i32
    %c0_i32_0 = arith.constant 0 : i32
    %c0_i32_1 = arith.constant 0 : i32
    return %c0_i32, %c0_i32_0 : i32, i32
  }
  func.func @transform_3(%arg0: i32) -> (i32, i32) {
    %c0_i32 = arith.constant 0 : i32
    %c0_i32_0 = arith.constant 0 : i32
    %c0_i32_1 = arith.constant 0 : i32
    return %c0_i32, %c0_i32_0 : i32, i32
  }
  func.func @transform_4(%arg0: i32) -> (i32, i32) {
    %c0_i32 = arith.constant 0 : i32
    %c0_i32_0 = arith.constant 0 : i32
    %c0_i32_1 = arith.constant 0 : i32
    return %c0_i32, %c0_i32_0 : i32, i32
  }
  func.func @transform_5(%arg0: i32) -> i32 {
    %c0_i32 = arith.constant 0 : i32
    %c0_i32_0 = arith.constant 0 : i32
    return %c0_i32 : i32
  }
  func.func @transform_6(%arg0: i32) -> (i32, i32) {
    %c0_i32 = arith.constant 0 : i32
    %c0_i32_0 = arith.constant 0 : i32
    return %c0_i32, %arg0 : i32, i32
  }
}

</mosaic_0001>

<bundles_post_ra>
// kernel: tpu_custom_call.1
= control target key start
LH: loop header
LB: loop body
LE: loop exit
PB: predicated region body
PF: predicated region fallthrough
CT: control target
= control target key end

     0   :  { %vm91_vm0 = vcmask 1044480   ;;  %vm42_vm1 = vcmask 39936   ;;  %s1088_s0 = inlined_call_operand.vmem [shape: f32[5,128], index: 0, kind: input, shape index: {}]   ;;  %s1089_s1 = inlined_call_operand.vmem [shape: f32[128,5], index: 1, kind: input, shape index: {}]   ;;  %s1090_s2 = inlined_call_operand.vmem [shape: f32[128,128], index: 2, kind: input, shape index: {}]   ;;  %s1091_s3 = inlined_call_operand.vmem [shape: f32[128,1], index: 3, kind: input, shape index: {}]   ;;  %s1092_s4 = inlined_call_operand.vmem [shape: f32[1,128], index: 4, kind: input, shape index: {}]   ;;  %s1093_s5 = inlined_call_operand.<no memory space> [shape: f32[1], index: 5, kind: input, shape index: {}]   ;;  %s1094_s6 = inlined_call_operand.hbm [shape: f32[1,128], index: 6, kind: output, shape index: {}]  }
   0x1   :  { %v41_v0 = vld [vmem:[%s1088_s0] sm:$0x1f]  ;;  %v26_v2 = vld [vmem:[%s1089_s1 + $0x8] sm:$0xff]  ;;  %v27_v3 = vld [vmem:[%s1089_s1 + $0x10] sm:$0xff] }
   0x2   :  { %v25_v1 = vld [vmem:[%s1089_s1] sm:$0xff]  ;;  %700 = vmatprep.subr.msk.mxu0 %vm91_vm0, %v41_v0  ;;  %v28_v4 = vld [vmem:[%s1089_s1 + $0x18] sm:$0xff] }
   0x3   :  { %702 = vmatprep.mubr.msk.f32.mxu0 %vm42_vm1, %v25_v1  ;;  %701 = vmatpush3.msk.msra.mxu0 %vm91_vm0, %v41_v0  ;;  %v29_v5 = vld [vmem:[%s1089_s1 + $0x20] sm:$0xff] }
   0x4   :  { %703 = vmatmul.mubr.msk.f32.vlgmr.msra.gmra.mxu0 %vm42_vm1, %v26_v2 }
   0x5   :  { %705 = vmatprep.mubr.msk.f32.mxu0 %vm42_vm1, %v27_v3 }
   0x6   :  { %12 = vsyncpa [#allocation4], 0  ;;  %v30_v6 = vld [vmem:[%s1089_s1 + $0x28] sm:$0xff]  ;;  %v31_v7 = vld [vmem:[%s1089_s1 + $0x30] sm:$0xff]  ;;  %v845_v20 = vmov 0   ;;  %vm847_vm2 = vmmov 0  }
   0x7   :  { %v32_v8 = vld [vmem:[%s1089_s1 + $0x38] sm:$0xff]  ;;  %v33_v9 = vld [vmem:[%s1089_s1 + $0x40] sm:$0xff]  ;;  %v34_v10 = vld [vmem:[%s1089_s1 + $0x48] sm:$0xff]  ;;  %821 = vset.pattern.permute.xlu0 %v845_v20  ;;  %822 = vset.pattern.permute.xlu1 %v845_v20  ;;  %s848_s17 = smov [#allocation3]  }
   0x8   :  { %706 = vmatmul.mubr.msk.f32.gmra.mxu0 %vm42_vm1, %v28_v4  ;;  %v35_v11 = vld [vmem:[%s1089_s1 + $0x50] sm:$0xff]  ;;  %v36_v12 = vld [vmem:[%s1089_s1 + $0x58] sm:$0xff]  ;;  %v37_v13 = vld [vmem:[%s1089_s1 + $0x60] sm:$0xff]  ;;  %s609_s18 = sshll.u32 %s848_s17, 4  ;;  %s610_s18 = int_to_ptr.vmem [resolvable:$true] %s609_s18 }
   0x9   :  { %708 = vmatprep.mubr.msk.f32.mxu0 %vm42_vm1, %v29_v5  ;;  %v38_v14 = vld [vmem:[%s1089_s1 + $0x68] sm:$0xff]  ;;  %v39_v15 = vld [vmem:[%s1089_s1 + $0x70] sm:$0xff]  ;;  %v40_v16 = vld [vmem:[%s1089_s1 + $0x78] sm:$0xff]  ;;  %s823_s19 = scalar_lea.vmem %s610_s18, 16  ;;  %s827_s20 = scalar_lea.vmem %s610_s18, 32 }
   0xa   :  { %v256_v17 = vld [vmem:[%s1090_s2] sm:$0xff]  ;;  %v287_v18 = vld [vmem:[%s1091_s3 + $0x78] sm:$0xff]  ;;  %v285_v19 = vld [vmem:[%s1091_s3 + $0x68] sm:$0xff]  ;;  %p824_p0 = scmp.ne.s32.totalorder %s610_s18, %s823_s19  ;;  %p828_p1 = scmp.lt.s32.totalorder %s610_s18, %s610_s18 }
   0xb   :  { %758 = vmatprep.mubr.f32.mxu1 %v256_v17  ;;  %365 = vperm.xlu0 %821, %v287_v18   ;;  %v286_v21 = vld [vmem:[%s1091_s3 + $0x70] sm:$0xff]  ;;  %v284_v22 = vld [vmem:[%s1091_s3 + $0x60] sm:$0xff]  ;;  %v283_v23 = vld [vmem:[%s1091_s3 + $0x58] sm:$0xff]  ;;  %v846_v18 = vmov 0.0   ;;  %p829_p2 = scmp.lt.s32.totalorder %s827_s20, %s823_s19 }
   0xc   :  { %709 = vmatmul.mubr.msk.f32.gmra.mxu0 %vm42_vm1, %v30_v6  ;;  %355 = vperm.xlu1 %822, %v285_v19   ;;  %v282_v24 = vld [vmem:[%s1091_s3 + $0x50] sm:$0xff]  ;;  %v281_v25 = vld [vmem:[%s1091_s3 + $0x48] sm:$0xff]  ;;  %v280_v26 = vld [vmem:[%s1091_s3 + $0x40] sm:$0xff] }
   0xd   :  { %711 = vmatprep.mubr.msk.f32.mxu0 %vm42_vm1, %v31_v7  ;;  %v279_v27 = vld [vmem:[%s1091_s3 + $0x38] sm:$0xff]  ;;  %v278_v28 = vld [vmem:[%s1091_s3 + $0x30] sm:$0xff]  ;;  %v277_v29 = vld [vmem:[%s1091_s3 + $0x28] sm:$0xff]  ;;  %782 = vmatprep.subr.mxu0 %v846_v18  ;;  %p830_p3 = por %p829_p2, %p828_p1 }
   0xe   :  { %v276_v30 = vld [vmem:[%s1091_s3 + $0x20] sm:$0xff]  ;;  %v275_v31 = vld [vmem:[%s1091_s3 + $0x18] sm:$0xff]  ;;  %v274_v32 = vld [vmem:[%s1091_s3 + $0x10] sm:$0xff] }
   0xf   :  { %360 = vperm.xlu0 %821, %v286_v21   ;;  %v273_v33 = vld [vmem:[%s1091_s3 + $0x8] sm:$0xff]  ;;  %v272_v34 = vld [vmem:[%s1091_s3] sm:$0xff]  ;;  %v258_v4 = vld [vmem:[%s1090_s2 + $0x10] sm:$0xff]  ;;  %p831_p4 = pnand %p830_p3, %p824_p0 }
  0x10   :  { %712 = vmatmul.mubr.msk.f32.gmra.mxu0 %vm42_vm1, %v32_v8  ;;  %350 = vperm.xlu1 %822, %v284_v22   ;;  %v257_v3 = vld [vmem:[%s1090_s2 + $0x8] sm:$0xff]  ;;  %v259_v5 = vld [vmem:[%s1090_s2 + $0x18] sm:$0xff]  ;;  %v260_v6 = vld [vmem:[%s1090_s2 + $0x20] sm:$0xff] }
  0x11   :  { %714 = vmatprep.mubr.msk.f32.mxu0 %vm42_vm1, %v33_v9  ;;  %v261_v7 = vld [vmem:[%s1090_s2 + $0x28] sm:$0xff]  ;;  %v262_v8 = vld [vmem:[%s1090_s2 + $0x30] sm:$0xff]  ;;  %v263_v9 = vld [vmem:[%s1090_s2 + $0x38] sm:$0xff] }
  0x12   :  { %v271_v17 = vld [vmem:[%s1090_s2 + $0x78] sm:$0xff] }
  0x13   :  { %345 = vperm.xlu0 %821, %v283_v23  }
  0x14   :  { %715 = vmatmul.mubr.msk.f32.gmra.mxu0 %vm42_vm1, %v34_v10  ;;  %340 = vperm.xlu1 %822, %v282_v24   ;;  %v264_v10 = vld [vmem:[%s1090_s2 + $0x40] sm:$0xff] }
  0x15   :  { %717 = vmatprep.mubr.msk.f32.mxu0 %vm42_vm1, %v35_v11  ;;  %v265_v11 = vld [vmem:[%s1090_s2 + $0x48] sm:$0xff] }
  0x17   :  { %335 = vperm.xlu0 %821, %v281_v25  }
  0x18   :  { %718 = vmatmul.mubr.msk.f32.gmra.mxu0 %vm42_vm1, %v36_v12  ;;  %330 = vperm.xlu1 %822, %v280_v26   ;;  %v266_v12 = vld [vmem:[%s1090_s2 + $0x50] sm:$0xff] }
  0x19   :  { %720 = vmatprep.mubr.msk.f32.mxu0 %vm42_vm1, %v37_v13  ;;  %v267_v13 = vld [vmem:[%s1090_s2 + $0x58] sm:$0xff] }
  0x1b   :  { %325 = vperm.xlu0 %821, %v279_v27  }
  0x1c   :  { %721 = vmatmul.mubr.msk.f32.gmra.mxu0 %vm42_vm1, %v38_v14  ;;  %320 = vperm.xlu1 %822, %v278_v28   ;;  %v268_v14 = vld [vmem:[%s1090_s2 + $0x60] sm:$0xff] }
  0x1d   :  { %723 = vmatprep.mubr.msk.f32.mxu0 %vm42_vm1, %v39_v15  ;;  %v269_v15 = vld [vmem:[%s1090_s2 + $0x68] sm:$0xff] }
  0x1f   :  { %315 = vperm.xlu0 %821, %v277_v29  }
  0x20   :  { %724 = vmatmul.mubr.msk.f32.gmra.mxu0 %vm42_vm1, %v40_v16  ;;  %310 = vperm.xlu1 %822, %v276_v30   ;;  %v270_v16 = vld [vmem:[%s1090_s2 + $0x70] sm:$0xff] }
  0x21   :  { %814 = vmatprep.mubr.msk.f32.mxu0 %vm847_vm2, %v846_v18 }
  0x23   :  { %305 = vperm.xlu0 %821, %v275_v31  }
  0x24   :  { %300 = vperm.xlu1 %822, %v274_v32  }
  0x27   :  { %295 = vperm.xlu0 %821, %v273_v33  }
  0x28   :  { %290 = vperm.xlu1 %822, %v272_v34  }
  0x86   :  { %v366_v24 = vpop.permute.xlu0 %365 }
  0x87   :  { %v356_v26 = vpop.permute.xlu1 %355 }
  0x8a   :  { %v361_v29 = vpop.permute.xlu0 %360 }
  0x8b   :  { %v351_v31 = vpop.permute.xlu1 %350 }
  0x8e   :  { %v346_v34 = vpop.permute.xlu0 %345 }
  0xc4   :  { %v704_v35 = vpop.f32.mrf.mxu0 }
  0xc5   :  { %v241_v1 = vmax.f32 %v704_v35, 0.0 }
  0xc6   :  { %v1002_v36 = vpop.f32.mrf.mxu0 }
  0xc7   :  { %v240_v2 = vmax.f32 %v1002_v36, 0.0  ;;  %v341_v36 = vpop.permute.xlu1 %340 }
  0xc8   :  { %v707_v37 = vpop.f32.mrf.mxu0 }
  0xc9   :  { %v243_v63 = vmax.f32 %v707_v37, 0.0 }
  0xca   :  { %v171_v38 = vpop.f32.mrf.mxu0 }
  0xcb   :  { %v242_v0 = vmax.f32 %v171_v38, 0.0 }
  0xcc   :  { %v710_v39 = vpop.f32.mrf.mxu0 }
  0xcd   :  { %v245_v61 = vmax.f32 %v710_v39, 0.0  ;;  %v336_v39 = vpop.permute.xlu0 %335 }
  0xce   :  { %v181_v40 = vpop.f32.mrf.mxu0 }
  0xcf   :  { %v244_v62 = vmax.f32 %v181_v40, 0.0 }
  0xd0   :  { %v713_v41 = vpop.f32.mrf.mxu0 }
  0xd1   :  { %v247_v59 = vmax.f32 %v713_v41, 0.0 }
  0xd2   :  { %v191_v42 = vpop.f32.mrf.mxu0 }
  0xd3   :  { %v246_v60 = vmax.f32 %v191_v42, 0.0  ;;  %v331_v42 = vpop.permute.xlu1 %330 }
  0xd4   :  { %v716_v43 = vpop.f32.mrf.mxu0 }
  0xd5   :  { %v249_v57 = vmax.f32 %v716_v43, 0.0 }
  0xd6   :  { %v201_v44 = vpop.f32.mrf.mxu0 }
  0xd7   :  { %v248_v58 = vmax.f32 %v201_v44, 0.0 }
  0xd8   :  { %v719_v45 = vpop.f32.mrf.mxu0 }
  0xd9   :  { %v251_v55 = vmax.f32 %v719_v45, 0.0 }
  0xda   :  { %v211_v46 = vpop.f32.mrf.mxu0 }
  0xdb   :  { %v250_v56 = vmax.f32 %v211_v46, 0.0 }
  0xdc   :  { %v722_v47 = vpop.f32.mrf.mxu0 }
  0xdd   :  { %v253_v53 = vmax.f32 %v722_v47, 0.0 }
  0xde   :  { %v221_v48 = vpop.f32.mrf.mxu0 }
  0xdf   :  { %v252_v54 = vmax.f32 %v221_v48, 0.0 }
  0xe0   :  { %v725_v49 = vpop.f32.mrf.mxu0 }
  0xe1   :  { %v255_v50 = vmax.f32 %v725_v49, 0.0  ;;  %v326_v49 = vpop.permute.xlu0 %325 }
  0xe2   :  { %v231_v51 = vpop.f32.mrf.mxu0 }
  0xe3   :  { %v254_v52 = vmax.f32 %v231_v51, 0.0  ;;  %726 = vmatprep.subr.mxu1 %v255_v50 }
  0xe4   :  { %727 = vmatpush3.msra.mxu1 %v255_v50 }
  0xe5   :  { %728 = vmatprep.subr.mxu1 %v254_v52 }
  0xe6   :  { %729 = vmatpush3.msra.mxu1 %v254_v52  ;;  %v321_v52 = vpop.permute.xlu1 %320 }
  0xe7   :  { %730 = vmatprep.subr.mxu1 %v253_v53 }
  0xe8   :  { %731 = vmatpush3.msra.mxu1 %v253_v53 }
  0xe9   :  { %732 = vmatprep.subr.mxu1 %v252_v54 }
  0xea   :  { %733 = vmatpush3.msra.mxu1 %v252_v54 }
  0xeb   :  { %734 = vmatprep.subr.mxu1 %v251_v55 }
  0xec   :  { %735 = vmatpush3.msra.mxu1 %v251_v55 }
  0xed   :  { %736 = vmatprep.subr.mxu1 %v250_v56 }
  0xee   :  { %737 = vmatpush3.msra.mxu1 %v250_v56 }
  0xef   :  { %738 = vmatprep.subr.mxu1 %v249_v57 }
  0xf0   :  { %739 = vmatpush3.msra.mxu1 %v249_v57  ;;  %v316_v57 = vpop.permute.xlu0 %315 }
  0xf1   :  { %740 = vmatprep.subr.mxu1 %v248_v58 }
  0xf2   :  { %741 = vmatpush3.msra.mxu1 %v248_v58 }
  0xf3   :  { %742 = vmatprep.subr.mxu1 %v247_v59 }
  0xf4   :  { %743 = vmatpush3.msra.mxu1 %v247_v59 }
  0xf5   :  { %744 = vmatprep.subr.mxu1 %v246_v60 }
  0xf6   :  { %745 = vmatpush3.msra.mxu1 %v246_v60  ;;  %v311_v60 = vpop.permute.xlu1 %310 }
  0xf7   :  { %746 = vmatprep.subr.mxu1 %v245_v61 }
  0xf8   :  { %747 = vmatpush3.msra.mxu1 %v245_v61 }
  0xf9   :  { %748 = vmatprep.subr.mxu1 %v244_v62 }
  0xfa   :  { %749 = vmatpush3.msra.mxu1 %v244_v62 }
  0xfb   :  { %750 = vmatprep.subr.mxu1 %v243_v63 }
  0xfc   :  { %751 = vmatpush3.msra.mxu1 %v243_v63 }
  0xfd   :  { %752 = vmatprep.subr.mxu1 %v242_v0 }
  0xfe   :  { %753 = vmatpush3.msra.mxu1 %v242_v0 }
  0xff   :  { %754 = vmatprep.subr.mxu1 %v241_v1 }
 0x100   :  { %755 = vmatpush3.msra.mxu1 %v241_v1  ;;  %v306_v1 = vpop.permute.xlu0 %305 }
 0x101   :  { %756 = vmatprep.subr.mxu1 %v240_v2 }
 0x102   :  { %757 = vmatpush3.msra.mxu1 %v240_v2 }
 0x103   :  { %759 = vmatmul.mubr.f32.vlgmr.msra.gmra.mxu1 %v257_v3 }
 0x104   :  { %761 = vmatprep.mubr.f32.mxu1 %v258_v4  ;;  %v301_v4 = vpop.permute.xlu1 %300 }
 0x107   :  { %762 = vmatmul.mubr.f32.gmra.mxu1 %v259_v5 }
 0x108   :  { %764 = vmatprep.mubr.f32.mxu1 %v260_v6 }
 0x10b   :  { %765 = vmatmul.mubr.f32.gmra.mxu1 %v261_v7 }
 0x10c   :  { %767 = vmatprep.mubr.f32.mxu1 %v262_v8 }
 0x10f   :  { %768 = vmatmul.mubr.f32.gmra.mxu1 %v263_v9  ;;  %v296_v9 = vpop.permute.xlu0 %295 }
 0x110   :  { %770 = vmatprep.mubr.f32.mxu1 %v264_v10 }
 0x113   :  { %771 = vmatmul.mubr.f32.gmra.mxu1 %v265_v11 }
 0x114   :  { %773 = vmatprep.mubr.f32.mxu1 %v266_v12  ;;  %v291_v12 = vpop.permute.xlu1 %290 }
 0x117   :  { %774 = vmatmul.mubr.f32.gmra.mxu1 %v267_v13 }
 0x118   :  { %776 = vmatprep.mubr.f32.mxu1 %v268_v14 }
 0x11b   :  { %777 = vmatmul.mubr.f32.gmra.mxu1 %v269_v15 }
 0x11c   :  { %779 = vmatprep.mubr.f32.mxu1 %v270_v16 }
 0x11f   :  { %780 = vmatmul.mubr.f32.gmra.mxu1 %v271_v17 }
 0x1c3   :  { %v1052_v19 = vpop.f32.mrf.mxu1 }
 0x1c4   :  { %v440_v13 = vadd.f32 %v1052_v19, %v296_v9  ;;  %v529_v19 = vld [vmem:[%s1092_s4] sm:$0x1] }
 0x1c5   :  { %v1054_v20 = vpop.f32.mrf.mxu1 }
 0x1c6   :  { %v435_v15 = vadd.f32 %v1054_v20, %v291_v12  ;;  %v514_v17 = vmax.f32 %v440_v13, 0.0  ;;  %v531_v20 = vstv %s1093_s5 }
 0x1c7   :  { %v1056_v21 = vpop.f32.mrf.mxu1 }
 0x1c8   :  { %v450_v7 = vadd.f32 %v1056_v21, %v306_v1  ;;  %v513_v21 = vmax.f32 %v435_v15, 0.0 }
 0x1c9   :  { %v1058_v22 = vpop.f32.mrf.mxu1 }
 0x1ca   :  { %v445_v10 = vadd.f32 %v1058_v22, %v301_v4  ;;  %v516_v14 = vmax.f32 %v450_v7, 0.0 }
 0x1cb   :  { %v766_v23 = vpop.f32.mrf.mxu1 }
 0x1cc   :  { %v460_v2 = vadd.f32 %v766_v23, %v316_v57  ;;  %v515_v16 = vmax.f32 %v445_v10, 0.0 }
 0x1cd   :  { %v454_v25 = vpop.f32.mrf.mxu1 }
 0x1ce   :  { %v455_v5 = vadd.f32 %v454_v25, %v311_v60  ;;  %v518_v8 = vmax.f32 %v460_v2, 0.0 }
 0x1cf   :  { %v769_v27 = vpop.f32.mrf.mxu1 }
 0x1d0   :  { %v470_v61 = vadd.f32 %v769_v27, %v326_v49  ;;  %v517_v11 = vmax.f32 %v455_v5, 0.0 }
 0x1d1   :  { %v464_v28 = vpop.f32.mrf.mxu1 }
 0x1d2   :  { %v465_v63 = vadd.f32 %v464_v28, %v321_v52  ;;  %v520_v3 = vmax.f32 %v470_v61, 0.0 }
 0x1d3   :  { %v772_v30 = vpop.f32.mrf.mxu1 }
 0x1d4   :  { %v480_v55 = vadd.f32 %v772_v30, %v336_v39  ;;  %v519_v6 = vmax.f32 %v465_v63, 0.0 }
 0x1d5   :  { %v474_v32 = vpop.f32.mrf.mxu1 }
 0x1d6   :  { %v475_v58 = vadd.f32 %v474_v32, %v331_v42  ;;  %v522_v62 = vmax.f32 %v480_v55, 0.0 }
 0x1d7   :  { %v775_v33 = vpop.f32.mrf.mxu1 }
 0x1d8   :  { %v490_v50 = vadd.f32 %v775_v33, %v346_v34  ;;  %v521_v0 = vmax.f32 %v475_v58, 0.0 }
 0x1d9   :  { %v484_v35 = vpop.f32.mrf.mxu1 }
 0x1da   :  { %v485_v53 = vadd.f32 %v484_v35, %v341_v36  ;;  %v524_v56 = vmax.f32 %v490_v50, 0.0 }
 0x1db   :  { %v778_v37 = vpop.f32.mrf.mxu1 }
 0x1dc   :  { %v500_v44 = vadd.f32 %v778_v37, %v356_v26  ;;  %v523_v59 = vmax.f32 %v485_v53, 0.0 }
 0x1dd   :  { %v494_v38 = vpop.f32.mrf.mxu1 }
 0x1de   :  { %v495_v47 = vadd.f32 %v494_v38, %v351_v31  ;;  %v526_v51 = vmax.f32 %v500_v44, 0.0 }
 0x1df   :  { %v781_v40 = vpop.f32.mrf.mxu1 }
 0x1e0   :  { %v510_v41 = vadd.f32 %v781_v40, %v366_v24  ;;  %v525_v54 = vmax.f32 %v495_v47, 0.0 }
 0x1e1   :  { %v504_v43 = vpop.f32.mrf.mxu1 }
 0x1e2   :  { %v528_v45 = vmax.f32 %v510_v41, 0.0  ;;  %v505_v46 = vadd.f32 %v504_v43, %v361_v29 }
 0x1e4   :  { %v527_v48 = vmax.f32 %v505_v46, 0.0  ;;  %783 = vmatpush3.msra.mxu0 %v528_v45 }
 0x1e5   :  { %784 = vmatprep.subr.mxu0 %v846_v18 }
 0x1e6   :  { %785 = vmatpush3.msra.mxu0 %v527_v48 }
 0x1e7   :  { %786 = vmatprep.subr.mxu0 %v846_v18 }
 0x1e8   :  { %787 = vmatpush3.msra.mxu0 %v526_v51 }
 0x1e9   :  { %788 = vmatprep.subr.mxu0 %v846_v18 }
 0x1ea   :  { %789 = vmatpush3.msra.mxu0 %v525_v54 }
 0x1eb   :  { %790 = vmatprep.subr.mxu0 %v846_v18 }
 0x1ec   :  { %791 = vmatpush3.msra.mxu0 %v524_v56 }
 0x1ed   :  { %792 = vmatprep.subr.mxu0 %v846_v18 }
 0x1ee   :  { %793 = vmatpush3.msra.mxu0 %v523_v59 }
 0x1ef   :  { %794 = vmatprep.subr.mxu0 %v846_v18 }
 0x1f0   :  { %795 = vmatpush3.msra.mxu0 %v522_v62 }
 0x1f1   :  { %796 = vmatprep.subr.mxu0 %v846_v18 }
 0x1f2   :  { %797 = vmatpush3.msra.mxu0 %v521_v0 }
 0x1f3   :  { %798 = vmatprep.subr.mxu0 %v846_v18 }
 0x1f4   :  { %799 = vmatpush3.msra.mxu0 %v520_v3 }
 0x1f5   :  { %800 = vmatprep.subr.mxu0 %v846_v18 }
 0x1f6   :  { %801 = vmatpush3.msra.mxu0 %v519_v6 }
 0x1f7   :  { %802 = vmatprep.subr.mxu0 %v846_v18 }
 0x1f8   :  { %803 = vmatpush3.msra.mxu0 %v518_v8 }
 0x1f9   :  { %804 = vmatprep.subr.mxu0 %v846_v18 }
 0x1fa   :  { %805 = vmatpush3.msra.mxu0 %v517_v11 }
 0x1fb   :  { %806 = vmatprep.subr.mxu0 %v846_v18 }
 0x1fc   :  { %807 = vmatpush3.msra.mxu0 %v516_v14 }
 0x1fd   :  { %808 = vmatprep.subr.mxu0 %v846_v18 }
 0x1fe   :  { %809 = vmatpush3.msra.mxu0 %v515_v16 }
 0x1ff   :  { %810 = vmatprep.subr.mxu0 %v846_v18 }
 0x200   :  { %811 = vmatpush3.msra.mxu0 %v514_v17 }
 0x201   :  { %812 = vmatprep.subr.mxu0 %v846_v18 }
 0x202   :  { %813 = vmatpush3.msra.mxu0 %v513_v21 }
 0x203   :  { %815 = vmatmul.mubr.f32.vlgmr.msra.gmra.mxu0 %v529_v19 }
 0x2c3   :  { %v598_v22 = vpop.f32.mrf.mxu0 }
 0x2c4   :  { %v599_v23 = vadd.f32 %v598_v22, %v531_v20 }
 0x2c5   :  { %v816_v24 = vpop.f32.mrf.mxu0 }
 0x2c6   :  { %602 = vst [vmem:[#allocation3] sm:$0x1] %v599_v23 }
 0x2c7   :  { %834 = shalt.err (!%p831_p4)
}
 0x2c8   :  { %612 = dma.vmem_to_hbm [thread:$0]  %s610_s18, 16, %s1094_s6, [#allocation4]  }
 0x2c9   :  { %843 = dma.done.wait [#allocation4], 16  }
 0x2ca   :  { %844 = vsyncadd [#allocation4], 4294967280 }
 0x2cb   :  { %616 = vsyncpa [#allocation4], 1 }

</bundles_post_ra>
